<compile_context>
chip_gen: v7x
topology: tpu7x:2x2x1
jax: 0.10.0
libtpu: 0.0.40
codegen_flags: <defaults>
</compile_context>

<pallas_src>
import functools

import jax
import jax.numpy as jnp
from jax.experimental import pallas as pl
from jax.experimental.pallas import tpu as pltpu


# ---------------- in-kernel helpers (traced inside the Pallas body) -----------

def _softmax_last(x):
    m = jnp.max(x, axis=-1, keepdims=True)
    e = jnp.exp(x - m)
    # EUP approx reciprocal instead of an exact divide.
    return e * pl.reciprocal(jnp.sum(e, axis=-1, keepdims=True), approx=True)


# ------------------------------- kernel ---------------------------------------

def _sha_kernel(x_ref, wq_ref, bq_ref, wk_ref, bk_ref, wv_ref, bv_ref,
                wg_ref, wp_ref, bp_ref, o_ref, *, bt, n, d):
    f32 = jnp.float32
    bf16 = jnp.bfloat16
    xs = x_ref[...]                                             # (Bt*N, D)

    # Dense projections on the flattened slab -> MXU M-dim = Bt*N rows.
    # (scale for q is already folded into wq/bq in the wrapper.)
    q = jnp.dot(xs, wq_ref[...], preferred_element_type=f32) + bq_ref[...]
    k = jnp.dot(xs, wk_ref[...], preferred_element_type=f32) + bk_ref[...]
    v = jnp.dot(xs, wv_ref[...], preferred_element_type=f32) + bv_ref[...]
    gw = jnp.dot(v, wg_ref[...], preferred_element_type=f32)   # (Bt*N, GP)

    # Leading-dim splits only (layout-preserving, no relayout).
    qb = q.reshape(bt, n, d).astype(bf16)
    kb = k.reshape(bt, n, d).astype(bf16)
    vb = v.reshape(bt, n, d)
    gwb = gw.reshape(bt, n, gw.shape[-1])

    # attn_scores = softmax(q k^T)   (scale folded into q; bf16 MXU, f32 acc)
    scores = jnp.einsum('bnd,bmd->bnm', qb, kb,
                        preferred_element_type=f32)             # (Bt,N,N)
    scores = _softmax_last(scores)

    # group weights
    gwb = _softmax_last(gwb)
    gw16 = gwb.astype(bf16)
    grp = jnp.einsum('bnm,bkm->bnk', gw16, gw16,
                     preferred_element_type=f32)                # (Bt,N,N)
    grp = grp * (float(n) * pl.reciprocal(
        jnp.sum(grp, axis=-1, keepdims=True) + 1e-8, approx=True))

    aw = scores * grp
    aw = aw * pl.reciprocal(jnp.sum(aw, axis=-1, keepdims=True) + 1e-8,
                            approx=True)
    # dropout: identity (eval mode)

    # ctx = aw @ v : bf16 MXU operands (aw rows sum to 1 -> small quant error).
    ctx = jnp.einsum('bnm,bmd->bnd', aw.astype(bf16), vb.astype(bf16),
                     preferred_element_type=f32)                # (Bt,N,D)

    out = jnp.dot(ctx.reshape(bt * n, d), wp_ref[...],
                  preferred_element_type=f32) + bp_ref[...]
    o_ref[...] = out.astype(o_ref.dtype)


# ------------------------------- wrapper ---------------------------------------

def _vmem_budget():
    """(per-step byte cap for the bt picker, vmem_limit_bytes).

    Generation-aware: ~100 MiB scoped VMEM on v5e/v6e (128 MiB physical),
    ~48 MiB on v7x (64 MiB physical).  Falls back to v7x-safe numbers if the
    hardware query is unavailable."""
    try:
        info = pltpu.get_tpu_info()
        phys = int(getattr(info, "vmem_capacity_bytes", 64 << 20))
    except Exception:
        phys = 64 << 20
    limit = min((phys * 3) // 4, 100 << 20)   # leave compiler/pipeline headroom
    limit = max(limit, 32 << 20)
    cap = int(limit * 0.85)
    return cap, int(limit)


def _pick_batch_block(batch, seq, dim, gp_num, *, target_rows=512,
                      vmem_cap_bytes=40 << 20):
    """Batches per grid step.

    * fill the MXU M-dimension: >= target_rows (512 keeps both 256-row MXUs on
      v6e/v7x -- or all four 128-row MXUs on v5e -- busy per pass),
    * keep the estimated per-step VMEM footprint under vmem_cap_bytes,
    * pick the SMALLEST bt hitting the row target so the parallel grid keeps
      as many steps as possible (>= 2 shards across v7x's two TensorCores).
    At tiny sizes (below the row target) one step does everything, since
    per-step overhead (~0.35 us) would dominate.
    """
    def vmem_bytes(bt):
        rows = bt * seq
        io = 2 * 2 * rows * dim * 4                        # double-buffered in/out
        w = (4 * dim * dim + gp_num * dim + 4 * dim) * 4   # resident weights/biases
        live = rows * (4 * dim + gp_num) * 4 + 3 * bt * seq * seq * 4
        return io + w + live

    divisors = [d for d in range(1, batch + 1) if batch % d == 0]
    # (8,128) rule: second-to-last block dim must be a multiple of 8 or full.
    legal = [d for d in divisors if (d * seq) % 8 == 0 or d == batch]
    fits = [d for d in legal if vmem_bytes(d) <= vmem_cap_bytes]
    if not fits:
        return batch                      # degenerate: single full block
    good = [d for d in fits if d * seq >= target_rows]
    if good:
        return min(good)                  # smallest bt at target -> most steps
    return max(fits)


def single_head_attention(x, params, *, interpret=False):
    B, N, D = x.shape
    scale = D ** -0.5
    GP = params['gp_w'].shape[0]

    vmem_cap, vmem_limit = _vmem_budget()
    bt = _pick_batch_block(B, N, D, GP, vmem_cap_bytes=vmem_cap)
    gb = B // bt

    # Pre-split / pre-transpose torch-style (out, in) weights to (in, out) so
    # the kernel computes y = x @ W + b and never slices qkv columns in-lane.
    # Fold the dim**-0.5 softmax scale into the q weights/bias (free, exact).
    # TODO(synk): when D is a multiple of 128, fuse wq|wk|wv into one (D, 3D)
    # matmul and slice q/k/v at 128-aligned lane offsets.
    wqkv = params['wqkv']                                # (3D, D)
    bqkv = params['bqkv']
    wq = wqkv[:D].T * scale
    wk, wv = wqkv[D:2 * D].T, wqkv[2 * D:].T
    bq = bqkv[:D][None] * scale
    bk, bv = bqkv[D:2 * D][None], bqkv[2 * D:][None]
    wg = params['gp_w'].T                                # (D, GP), no bias
    wp = params['wproj'].T                               # (D, D)
    bp = params['bproj'][None]                           # (1, D)

    x_flat = x.reshape(B * N, D)
    consts = (wq, bq, wk, bk, wv, bv, wg, wp, bp)

    def const_spec(a):
        nd = a.ndim
        return pl.BlockSpec(a.shape, lambda i, _nd=nd: (0,) * _nd)

    kernel = functools.partial(_sha_kernel, bt=bt, n=N, d=D)

    out_flat = pl.pallas_call(
        kernel,
        out_shape=jax.ShapeDtypeStruct((B * N, D), x.dtype),
        grid=(gb,),
        in_specs=[pl.BlockSpec((bt * N, D), lambda i: (i, 0))]
                + [const_spec(a) for a in consts],
        out_specs=pl.BlockSpec((bt * N, D), lambda i: (i, 0)),
        compiler_params=pltpu.CompilerParams(
            dimension_semantics=("parallel",),
            vmem_limit_bytes=vmem_limit),
        interpret=interpret,
    )(x_flat, *consts)

    return out_flat.reshape(B, N, D)


# --------------------------- pure-JAX reference ---------------------------------

def single_head_attention_ref(x, params):
    B, N, D = x.shape
    scale = D ** -0.5
    qkv = x @ params['wqkv'].T + params['bqkv']
    q, k, v = jnp.split(qkv, 3, axis=-1)
    attn = jax.nn.softmax(jnp.einsum('bnd,bmd->bnm', q, k) * scale, axis=-1)
    gw = jax.nn.softmax(v @ params['gp_w'].T, axis=-1)
    grp = jnp.einsum('bnm,bkm->bnk', gw, gw)
    grp = grp / (grp.sum(-1, keepdims=True) + 1e-8) * N
    aw = attn * grp
    aw = aw / (aw.sum(-1, keepdims=True) + 1e-8)
    out = jnp.einsum('bnm,bmd->bnd', aw, v)
    return out @ params['wproj'].T + params['bproj']


# --------------------------------- main -----------------------------------------

if __name__ == "__main__":
    # NOTE: at this toy shape (16 rows, 32 lanes) the call is launch-overhead
    # bound; the kernel structure targets realistic B*N, D.
    B, N, D, GP = 2, 8, 32, 16      # batch, seq, dim, gp_num

    key = jax.random.PRNGKey(0)
    ks = jax.random.split(key, 6)
    s = 0.1
    params = dict(
        wqkv=s * jax.random.normal(ks[0], (3 * D, D), jnp.float32),
        bqkv=s * jax.random.normal(ks[1], (3 * D,), jnp.float32),
        wproj=s * jax.random.normal(ks[2], (D, D), jnp.float32),
        bproj=s * jax.random.normal(ks[3], (D,), jnp.float32),
        gp_w=s * jax.random.normal(ks[4], (GP, D), jnp.float32),
    )
    x = jax.random.normal(ks[5], (B, N, D), jnp.float32)

    out = jax.block_until_ready(single_head_attention(x, params))
    ref = single_head_attention_ref(x, params)

    assert out.shape == (B, N, D)
    max_err = float(jnp.max(jnp.abs(out - ref)))
    assert jnp.allclose(out, ref, atol=2e-3, rtol=2e-3), f"max_err={max_err}"

    print("KERNEL_OK")
</pallas_src>

<mosaic_0001>
module attributes {stable_mosaic.version = 11 : i64} {
  func.func @_sha_kernel(%arg0: i32, %arg1: memref<16x32xf32, #tpu.memory_space<vmem>>, %arg2: memref<32x32xf32, #tpu.memory_space<vmem>>, %arg3: memref<1x32xf32, #tpu.memory_space<vmem>>, %arg4: memref<32x32xf32, #tpu.memory_space<vmem>>, %arg5: memref<1x32xf32, #tpu.memory_space<vmem>>, %arg6: memref<32x32xf32, #tpu.memory_space<vmem>>, %arg7: memref<1x32xf32, #tpu.memory_space<vmem>>, %arg8: memref<32x16xf32, #tpu.memory_space<vmem>>, %arg9: memref<32x32xf32, #tpu.memory_space<vmem>>, %arg10: memref<1x32xf32, #tpu.memory_space<vmem>>, %arg11: memref<16x32xf32, #tpu.memory_space<vmem>>) attributes {dimension_semantics = [#tpu.dimension_semantics<parallel>], iteration_bounds = array<i64: 1>, scalar_prefetch = 0 : i64, scratch_operands = 0 : i64, tpu.core_type = #tpu.core_type<tc>, window_params = [{transform_indices = @transform_0, window_bounds = array<i64: 16, 32>}, {pipeline_mode = #tpu.pipeline_mode<synchronous>, transform_indices = @transform_1, window_bounds = array<i64: 32, 32>}, {pipeline_mode = #tpu.pipeline_mode<synchronous>, transform_indices = @transform_2, window_bounds = array<i64: 1, 32>}, {pipeline_mode = #tpu.pipeline_mode<synchronous>, transform_indices = @transform_3, window_bounds = array<i64: 32, 32>}, {pipeline_mode = #tpu.pipeline_mode<synchronous>, transform_indices = @transform_4, window_bounds = array<i64: 1, 32>}, {pipeline_mode = #tpu.pipeline_mode<synchronous>, transform_indices = @transform_5, window_bounds = array<i64: 32, 32>}, {pipeline_mode = #tpu.pipeline_mode<synchronous>, transform_indices = @transform_6, window_bounds = array<i64: 1, 32>}, {pipeline_mode = #tpu.pipeline_mode<synchronous>, transform_indices = @transform_7, window_bounds = array<i64: 32, 16>}, {pipeline_mode = #tpu.pipeline_mode<synchronous>, transform_indices = @transform_8, window_bounds = array<i64: 32, 32>}, {pipeline_mode = #tpu.pipeline_mode<synchronous>, transform_indices = @transform_9, window_bounds = array<i64: 1, 32>}, {transform_indices = @transform_10, window_bounds = array<i64: 16, 32>}]} {
    %c0 = arith.constant 0 : index
    %c0_0 = arith.constant 0 : index
    %0 = vector.load %arg1[%c0, %c0_0] : memref<16x32xf32, #tpu.memory_space<vmem>>, vector<16x32xf32>
    %c0_1 = arith.constant 0 : index
    %c0_2 = arith.constant 0 : index
    %1 = vector.load %arg2[%c0_1, %c0_2] : memref<32x32xf32, #tpu.memory_space<vmem>>, vector<32x32xf32>
    %cst = arith.constant dense<0.000000e+00> : vector<16x32xf32>
    %2 = tpu.matmul %0, %1, %cst {dimension_numbers = #tpu.dot_dimension_numbers<[1], [0], [0], [1], [0, 0, 1, 1], [], []>} : vector<16x32xf32>, vector<32x32xf32>, vector<16x32xf32> -> vector<16x32xf32>
    %c0_3 = arith.constant 0 : index
    %c0_4 = arith.constant 0 : index
    %3 = vector.load %arg3[%c0_3, %c0_4] : memref<1x32xf32, #tpu.memory_space<vmem>>, vector<1x32xf32>
    %4 = vector.broadcast %3 : vector<1x32xf32> to vector<16x32xf32>
    %5 = arith.addf %2, %4 : vector<16x32xf32>
    %c0_5 = arith.constant 0 : index
    %c0_6 = arith.constant 0 : index
    %6 = vector.load %arg4[%c0_5, %c0_6] : memref<32x32xf32, #tpu.memory_space<vmem>>, vector<32x32xf32>
    %cst_7 = arith.constant dense<0.000000e+00> : vector<16x32xf32>
    %7 = tpu.matmul %0, %6, %cst_7 {dimension_numbers = #tpu.dot_dimension_numbers<[1], [0], [0], [1], [0, 0, 1, 1], [], []>} : vector<16x32xf32>, vector<32x32xf32>, vector<16x32xf32> -> vector<16x32xf32>
    %c0_8 = arith.constant 0 : index
    %c0_9 = arith.constant 0 : index
    %8 = vector.load %arg5[%c0_8, %c0_9] : memref<1x32xf32, #tpu.memory_space<vmem>>, vector<1x32xf32>
    %9 = vector.broadcast %8 : vector<1x32xf32> to vector<16x32xf32>
    %10 = arith.addf %7, %9 : vector<16x32xf32>
    %c0_10 = arith.constant 0 : index
    %c0_11 = arith.constant 0 : index
    %11 = vector.load %arg6[%c0_10, %c0_11] : memref<32x32xf32, #tpu.memory_space<vmem>>, vector<32x32xf32>
    %cst_12 = arith.constant dense<0.000000e+00> : vector<16x32xf32>
    %12 = tpu.matmul %0, %11, %cst_12 {dimension_numbers = #tpu.dot_dimension_numbers<[1], [0], [0], [1], [0, 0, 1, 1], [], []>} : vector<16x32xf32>, vector<32x32xf32>, vector<16x32xf32> -> vector<16x32xf32>
    %c0_13 = arith.constant 0 : index
    %c0_14 = arith.constant 0 : index
    %13 = vector.load %arg7[%c0_13, %c0_14] : memref<1x32xf32, #tpu.memory_space<vmem>>, vector<1x32xf32>
    %14 = vector.broadcast %13 : vector<1x32xf32> to vector<16x32xf32>
    %15 = arith.addf %12, %14 : vector<16x32xf32>
    %c0_15 = arith.constant 0 : index
    %c0_16 = arith.constant 0 : index
    %16 = vector.load %arg8[%c0_15, %c0_16] : memref<32x16xf32, #tpu.memory_space<vmem>>, vector<32x16xf32>
    %cst_17 = arith.constant dense<0.000000e+00> : vector<16x16xf32>
    %17 = tpu.matmul %15, %16, %cst_17 {dimension_numbers = #tpu.dot_dimension_numbers<[1], [0], [0], [1], [0, 0, 1, 1], [], []>} : vector<16x32xf32>, vector<32x16xf32>, vector<16x16xf32> -> vector<16x16xf32>
    %18 = vector.shape_cast %5 : vector<16x32xf32> to vector<2x8x32xf32>
    %19 = arith.truncf %18 : vector<2x8x32xf32> to vector<2x8x32xbf16>
    %20 = vector.shape_cast %10 : vector<16x32xf32> to vector<2x8x32xf32>
    %21 = arith.truncf %20 : vector<2x8x32xf32> to vector<2x8x32xbf16>
    %22 = vector.shape_cast %15 : vector<16x32xf32> to vector<2x8x32xf32>
    %23 = vector.shape_cast %17 : vector<16x16xf32> to vector<2x8x16xf32>
    "tpu.trace_start"() <{level = 10 : i32, message = "bnd,bmd->bnm"}> : () -> ()
    %cst_18 = arith.constant dense<0.000000e+00> : vector<2x8x8xf32>
    %24 = tpu.matmul %19, %21, %cst_18 {dimension_numbers = #tpu.dot_dimension_numbers<[2], [2], [1], [1], [0, 0, 0, 1, 1, 1], [0], [0]>} : vector<2x8x32xbf16>, vector<2x8x32xbf16>, vector<2x8x8xf32> -> vector<2x8x8xf32>
    "tpu.trace_stop"() : () -> ()
    %cst_19 = arith.constant dense<0xFF800000> : vector<2x8xf32>
    %25 = vector.multi_reduction <maximumf>, %24, %cst_19 [2] : vector<2x8x8xf32> to vector<2x8xf32>
    %26 = vector.shape_cast %25 : vector<2x8xf32> to vector<2x8x1xf32>
    %27 = vector.broadcast %26 : vector<2x8x1xf32> to vector<2x8x8xf32>
    %28 = arith.subf %24, %27 : vector<2x8x8xf32>
    %29 = math.exp %28 : vector<2x8x8xf32>
    %cst_20 = arith.constant dense<0.000000e+00> : vector<2x8xf32>
    %30 = vector.multi_reduction <add>, %29, %cst_20 [2] : vector<2x8x8xf32> to vector<2x8xf32>
    %31 = vector.shape_cast %30 : vector<2x8xf32> to vector<2x8x1xf32>
    %32 = tpu.reciprocal %31 {approx = true} : vector<2x8x1xf32> -> vector<2x8x1xf32>
    %33 = vector.broadcast %32 : vector<2x8x1xf32> to vector<2x8x8xf32>
    %34 = arith.mulf %29, %33 : vector<2x8x8xf32>
    %cst_21 = arith.constant dense<0xFF800000> : vector<2x8xf32>
    %35 = vector.multi_reduction <maximumf>, %23, %cst_21 [2] : vector<2x8x16xf32> to vector<2x8xf32>
    %36 = vector.shape_cast %35 : vector<2x8xf32> to vector<2x8x1xf32>
    %37 = vector.broadcast %36 : vector<2x8x1xf32> to vector<2x8x16xf32>
    %38 = arith.subf %23, %37 : vector<2x8x16xf32>
    %39 = math.exp %38 : vector<2x8x16xf32>
    %cst_22 = arith.constant dense<0.000000e+00> : vector<2x8xf32>
    %40 = vector.multi_reduction <add>, %39, %cst_22 [2] : vector<2x8x16xf32> to vector<2x8xf32>
    %41 = vector.shape_cast %40 : vector<2x8xf32> to vector<2x8x1xf32>
    %42 = tpu.reciprocal %41 {approx = true} : vector<2x8x1xf32> -> vector<2x8x1xf32>
    %43 = vector.broadcast %42 : vector<2x8x1xf32> to vector<2x8x16xf32>
    %44 = arith.mulf %39, %43 : vector<2x8x16xf32>
    %45 = arith.truncf %44 : vector<2x8x16xf32> to vector<2x8x16xbf16>
    "tpu.trace_start"() <{level = 10 : i32, message = "bnm,bkm->bnk"}> : () -> ()
    %cst_23 = arith.constant dense<0.000000e+00> : vector<2x8x8xf32>
    %46 = tpu.matmul %45, %45, %cst_23 {dimension_numbers = #tpu.dot_dimension_numbers<[2], [2], [1], [1], [0, 0, 0, 1, 1, 1], [0], [0]>} : vector<2x8x16xbf16>, vector<2x8x16xbf16>, vector<2x8x8xf32> -> vector<2x8x8xf32>
    "tpu.trace_stop"() : () -> ()
    %cst_24 = arith.constant dense<0.000000e+00> : vector<2x8xf32>
    %47 = vector.multi_reduction <add>, %46, %cst_24 [2] : vector<2x8x8xf32> to vector<2x8xf32>
    %48 = vector.shape_cast %47 : vector<2x8xf32> to vector<2x8x1xf32>
    %cst_25 = arith.constant 9.99999993E-9 : f32
    %49 = vector.broadcast %cst_25 : f32 to vector<2x8x1xf32>
    %50 = arith.addf %48, %49 : vector<2x8x1xf32>
    %51 = tpu.reciprocal %50 {approx = true} : vector<2x8x1xf32> -> vector<2x8x1xf32>
    %cst_26 = arith.constant 8.000000e+00 : f32
    %52 = vector.broadcast %cst_26 : f32 to vector<2x8x1xf32>
    %53 = arith.mulf %52, %51 : vector<2x8x1xf32>
    %54 = vector.broadcast %53 : vector<2x8x1xf32> to vector<2x8x8xf32>
    %55 = arith.mulf %46, %54 : vector<2x8x8xf32>
    %56 = arith.mulf %34, %55 : vector<2x8x8xf32>
    %cst_27 = arith.constant dense<0.000000e+00> : vector<2x8xf32>
    %57 = vector.multi_reduction <add>, %56, %cst_27 [2] : vector<2x8x8xf32> to vector<2x8xf32>
    %58 = vector.shape_cast %57 : vector<2x8xf32> to vector<2x8x1xf32>
    %cst_28 = arith.constant 9.99999993E-9 : f32
    %59 = vector.broadcast %cst_28 : f32 to vector<2x8x1xf32>
    %60 = arith.addf %58, %59 : vector<2x8x1xf32>
    %61 = tpu.reciprocal %60 {approx = true} : vector<2x8x1xf32> -> vector<2x8x1xf32>
    %62 = vector.broadcast %61 : vector<2x8x1xf32> to vector<2x8x8xf32>
    %63 = arith.mulf %56, %62 : vector<2x8x8xf32>
    %64 = arith.truncf %63 : vector<2x8x8xf32> to vector<2x8x8xbf16>
    %65 = arith.truncf %22 : vector<2x8x32xf32> to vector<2x8x32xbf16>
    "tpu.trace_start"() <{level = 10 : i32, message = "bnm,bmd->bnd"}> : () -> ()
    %cst_29 = arith.constant dense<0.000000e+00> : vector<2x8x32xf32>
    %66 = tpu.matmul %64, %65, %cst_29 {dimension_numbers = #tpu.dot_dimension_numbers<[2], [1], [1], [2], [0, 0, 0, 1, 1, 2], [0], [0]>} : vector<2x8x8xbf16>, vector<2x8x32xbf16>, vector<2x8x32xf32> -> vector<2x8x32xf32>
    "tpu.trace_stop"() : () -> ()
    %67 = vector.shape_cast %66 : vector<2x8x32xf32> to vector<16x32xf32>
    %c0_30 = arith.constant 0 : index
    %c0_31 = arith.constant 0 : index
    %68 = vector.load %arg9[%c0_30, %c0_31] : memref<32x32xf32, #tpu.memory_space<vmem>>, vector<32x32xf32>
    %cst_32 = arith.constant dense<0.000000e+00> : vector<16x32xf32>
    %69 = tpu.matmul %67, %68, %cst_32 {dimension_numbers = #tpu.dot_dimension_numbers<[1], [0], [0], [1], [0, 0, 1, 1], [], []>} : vector<16x32xf32>, vector<32x32xf32>, vector<16x32xf32> -> vector<16x32xf32>
    %c0_33 = arith.constant 0 : index
    %c0_34 = arith.constant 0 : index
    %70 = vector.load %arg10[%c0_33, %c0_34] : memref<1x32xf32, #tpu.memory_space<vmem>>, vector<1x32xf32>
    %71 = vector.broadcast %70 : vector<1x32xf32> to vector<16x32xf32>
    %72 = arith.addf %69, %71 : vector<16x32xf32>
    %c0_35 = arith.constant 0 : index
    %c0_36 = arith.constant 0 : index
    %73 = vector.load %arg11[%c0_35, %c0_36] : memref<16x32xf32, #tpu.memory_space<vmem>>, vector<16x32xf32>
    tpu.vector_store %arg11[%c0_35, %c0_36], %72 {strides = array<i32>} : memref<16x32xf32, #tpu.memory_space<vmem>>, vector<16x32xf32>,
    return
  }
  func.func @transform_0(%arg0: i32) -> (i32, i32) {
    %c0_i32 = arith.constant 0 : i32
    %c0_i32_0 = arith.constant 0 : i32
    return %arg0, %c0_i32 : i32, i32
  }
  func.func @transform_1(%arg0: i32) -> (i32, i32) {
    %c0_i32 = arith.constant 0 : i32
    %c0_i32_0 = arith.constant 0 : i32
    %c0_i32_1 = arith.constant 0 : i32
    return %c0_i32, %c0_i32_0 : i32, i32
  }
  func.func @transform_2(%arg0: i32) -> (i32, i32) {
    %c0_i32 = arith.constant 0 : i32
    %c0_i32_0 = arith.constant 0 : i32
    %c0_i32_1 = arith.constant 0 : i32
    return %c0_i32, %c0_i32_0 : i32, i32
  }
  func.func @transform_3(%arg0: i32) -> (i32, i32) {
    %c0_i32 = arith.constant 0 : i32
    %c0_i32_0 = arith.constant 0 : i32
    %c0_i32_1 = arith.constant 0 : i32
    return %c0_i32, %c0_i32_0 : i32, i32
  }
  func.func @transform_4(%arg0: i32) -> (i32, i32) {
    %c0_i32 = arith.constant 0 : i32
    %c0_i32_0 = arith.constant 0 : i32
    %c0_i32_1 = arith.constant 0 : i32
    return %c0_i32, %c0_i32_0 : i32, i32
  }
  func.func @transform_5(%arg0: i32) -> (i32, i32) {
    %c0_i32 = arith.constant 0 : i32
    %c0_i32_0 = arith.constant 0 : i32
    %c0_i32_1 = arith.constant 0 : i32
    return %c0_i32, %c0_i32_0 : i32, i32
  }
  func.func @transform_6(%arg0: i32) -> (i32, i32) {
    %c0_i32 = arith.constant 0 : i32
    %c0_i32_0 = arith.constant 0 : i32
    %c0_i32_1 = arith.constant 0 : i32
    return %c0_i32, %c0_i32_0 : i32, i32
  }
  func.func @transform_7(%arg0: i32) -> (i32, i32) {
    %c0_i32 = arith.constant 0 : i32
    %c0_i32_0 = arith.constant 0 : i32
    %c0_i32_1 = arith.constant 0 : i32
    return %c0_i32, %c0_i32_0 : i32, i32
  }
  func.func @transform_8(%arg0: i32) -> (i32, i32) {
    %c0_i32 = arith.constant 0 : i32
    %c0_i32_0 = arith.constant 0 : i32
    %c0_i32_1 = arith.constant 0 : i32
    return %c0_i32, %c0_i32_0 : i32, i32
  }
  func.func @transform_9(%arg0: i32) -> (i32, i32) {
    %c0_i32 = arith.constant 0 : i32
    %c0_i32_0 = arith.constant 0 : i32
    %c0_i32_1 = arith.constant 0 : i32
    return %c0_i32, %c0_i32_0 : i32, i32
  }
  func.func @transform_10(%arg0: i32) -> (i32, i32) {
    %c0_i32 = arith.constant 0 : i32
    %c0_i32_0 = arith.constant 0 : i32
    return %arg0, %c0_i32 : i32, i32
  }
}

</mosaic_0001>

<bundles_post_ra>
// kernel: tpu_custom_call.1
= control target key start
LH: loop header
LB: loop body
LE: loop exit
PB: predicated region body
PF: predicated region fallthrough
CT: control target
= control target key end

     0   :  { %15 = vsyncpa [#allocation3], 0  ;;  %s1456_s0 = inlined_call_operand.hbm [shape: f32[16,32], index: 0, kind: input, shape index: {}]   ;;  %s1457_s1 = inlined_call_operand.vmem [shape: f32[32,32], index: 1, kind: input, shape index: {}]   ;;  %s1458_s2 = inlined_call_operand.vmem [shape: f32[1,32], index: 2, kind: input, shape index: {}]   ;;  %s1459_s3 = inlined_call_operand.hbm [shape: f32[32,32], index: 3, kind: input, shape index: {}]   ;;  %s1460_s4 = inlined_call_operand.vmem [shape: f32[1,32], index: 4, kind: input, shape index: {}]   ;;  %s1461_s5 = inlined_call_operand.vmem [shape: f32[32,32], index: 5, kind: input, shape index: {}]   ;;  %s1462_s6 = inlined_call_operand.vmem [shape: f32[1,32], index: 6, kind: input, shape index: {}]   ;;  %s1463_s7 = inlined_call_operand.vmem [shape: f32[32,16], index: 7, kind: input, shape index: {}]   ;;  %s1464_s8 = inlined_call_operand.hbm [shape: f32[32,32], index: 8, kind: input, shape index: {}]   ;;  %s1465_s9 = inlined_call_operand.vmem [shape: f32[1,32], index: 9, kind: input, shape index: {}]   ;;  %s1466_s10 = inlined_call_operand.hbm [shape: f32[16,32], index: 10, kind: output, shape index: {}]  }
   0x1   :  { %16 = vsyncpa [#allocation6], 0 }
   0x2   :  { %17 = vsyncpa [#allocation4], 0  ;;  %s1216_s13 = smov [#allocation5]   ;;  %s1217_s15 = smov [#allocation2]  }
   0x3   :  { %s39_s14 = sshll.u32 %s1216_s13, 4  ;;  %s23_s16 = sshll.u32 %s1217_s15, 4  ;;  %s40_s14 = int_to_ptr.vmem [resolvable:$true] %s39_s14  ;;  %s1279_s16 = int_to_ptr.vmem [resolvable:$true] %s23_s16 }
   0x4   :  { %s1122_s19 = scalar_lea.hbm %s1459_s3, 512 }
   0x5   :  { %p1123_p0 = scmp.ne.s32.totalorder %s1459_s3, %s1122_s19  ;;  %p1126_p1 = scmp.lt.u32.totalorder %s1122_s19, %s1459_s3 }
   0x7   :  { %p1128_p2 = pnand %p1126_p1, %p1123_p0 }
   0x9   :  { %1131 = shalt.err (!%p1128_p2)
}
   0xa   :  { %s1132_s24 = scalar_lea.vmem %s40_s14, 512  ;;  %p1137_p4 = scmp.lt.s32.totalorder %s40_s14, %s40_s14 }
   0xb   :  { %p1133_p3 = scmp.ne.s32.totalorder %s40_s14, %s1132_s24  ;;  %p1138_p5 = scmp.lt.s32.totalorder %s1132_s24, %s1132_s24 }
   0xd   :  { %p1139_p6 = por %p1138_p5, %p1137_p4 }
   0xf   :  { %p1140_p7 = pnand %p1139_p6, %p1133_p3 }
  0x11   :  { %1143 = shalt.err (!%p1140_p7)
}
  0x12   :  { %s1218_s25 = smov 128   ;;  %s1219_s26 = smov 8  }
  0x13   :  { %45 = dma.hbm_to_vmem [thread:$0]  %s1459_s3, 512, %s40_s14, [#allocation6], %s1218_s25, %s1218_s25, %s1219_s26  }
  0x14   :  { %s1144_s11 = scalar_lea.hbm %s1456_s0, 256 }
  0x15   :  { %p1145_p8 = scmp.ne.s32.totalorder %s1456_s0, %s1144_s11  ;;  %p1148_p9 = scmp.lt.u32.totalorder %s1144_s11, %s1456_s0 }
  0x17   :  { %p1150_p10 = pnand %p1148_p9, %p1145_p8 }
  0x19   :  { %1153 = shalt.err (!%p1150_p10)
}
  0x1a   :  { %s1154_s18 = scalar_lea.vmem %s1279_s16, 256  ;;  %p1159_p12 = scmp.lt.s32.totalorder %s1279_s16, %s1279_s16 }
  0x1b   :  { %p1155_p11 = scmp.ne.s32.totalorder %s1279_s16, %s1154_s18  ;;  %p1160_p13 = scmp.lt.s32.totalorder %s1154_s18, %s1154_s18 }
  0x1d   :  { %p1161_p0 = por %p1160_p13, %p1159_p12 }
  0x1f   :  { %p1162_p1 = pnand %p1161_p0, %p1155_p11 }
  0x21   :  { %1165 = shalt.err (!%p1162_p1)
}
  0x22   :  { %29 = dma.hbm_to_vmem [thread:$0]  %s1456_s0, 256, %s1279_s16, [#allocation3], %s1218_s25, %s1218_s25, %s1219_s26  }
  0x23   :  { %s1220_s19 = smov [#allocation7]   ;;  %s1166_s23 = scalar_lea.hbm %s1464_s8, 512 }
  0x24   :  { %s59_s20 = sshll.u32 %s1220_s19, 4  ;;  %p1167_p2 = scmp.ne.s32.totalorder %s1464_s8, %s1166_s23  ;;  %s60_s20 = int_to_ptr.vmem [resolvable:$true] %s59_s20 }
  0x25   :  { %p1170_p3 = scmp.lt.u32.totalorder %s1166_s23, %s1464_s8 }
  0x27   :  { %p1172_p4 = pnand %p1170_p3, %p1167_p2 }
  0x29   :  { %1175 = shalt.err (!%p1172_p4)
}
  0x2a   :  { %s1176_s30 = scalar_lea.vmem %s60_s20, 512  ;;  %p1181_p6 = scmp.lt.s32.totalorder %s60_s20, %s60_s20 }
  0x2b   :  { %p1177_p5 = scmp.ne.s32.totalorder %s60_s20, %s1176_s30  ;;  %p1182_p7 = scmp.lt.s32.totalorder %s1176_s30, %s1176_s30 }
  0x2d   :  { %p1183_p8 = por %p1182_p7, %p1181_p6 }
  0x2f   :  { %p1184_p9 = pnand %p1183_p8, %p1177_p5 }
  0x31   :  { %1187 = shalt.err (!%p1184_p9)
}
  0x32   :  { %65 = dma.hbm_to_vmem [thread:$0]  %s1464_s8, 512, %s60_s20, [#allocation6], %s1218_s25, %s1218_s25, %s1219_s26  }
  0x33   :  { %1210 = dma.done.wait [#allocation3], 256  }
  0x34   :  { %1211 = vsyncadd [#allocation3], 4294967040 }
  0x35   :  { %1212 = dma.done.wait [#allocation6], 1024  }
  0x36   :  { %1213 = vsyncadd [#allocation6], 4294966272  ;;  %v80_v0 = vld [vmem:[%s1457_s1] sm:$0xff]  ;;  %v81_v1 = vld [vmem:[%s1457_s1 + $0x8] sm:$0xff]  ;;  %vm91_vm0 = vcmask 261120   ;;  %v1221_v26 = vmov 0.0  }
  0x37   :  { %v173_v2 = vld [vmem:[#allocation5] sm:$0xff]  ;;  %v1050_v3 = vpack.c.bf16 %v81_v1, %v80_v0  ;;  %v174_v4 = vld [vmem:[#allocation5 + $0x8] sm:$0xff]  ;;  %v175_v9 = vld [vmem:[#allocation5 + $0x10] sm:$0xff]  ;;  %vm1222_vm1 = vmmov 0   ;;  %vm549_vm2 = vcmask 130048   ;;  %vm526_vm3 = vcmask 64512  }
  0x38   :  { %v82_v5 = vld [vmem:[%s1457_s1 + $0x10] sm:$0xff]  ;;  %v83_v6 = vld [vmem:[%s1457_s1 + $0x18] sm:$0xff]  ;;  %v1058_v7 = vpack.c.bf16 %v174_v4, %v173_v2  ;;  %v176_v10 = vld [vmem:[#allocation5 + $0x18] sm:$0xff]  ;;  %vm695_vm4 = vcmask 1043456  }
  0x39   :  { %v1054_v8 = vpack.c.bf16 %v83_v6, %v82_v5  ;;  %v78_v11 = vld [vmem:[#allocation2] sm:$0xff]  ;;  %1051 = vmatprep.subr.bf16.mxu0 %v1050_v3  ;;  %v1062_v12 = vpack.c.bf16 %v176_v10, %v175_v9  ;;  %v260_v14 = vld [vmem:[%s1461_s5 + $0x8] sm:$0xff]  ;;  %v261_v18 = vld [vmem:[%s1461_s5 + $0x10] sm:$0xff] }
  0x3a   :  { %967 = vmatprep.mubr.msk.f32.mxu0 %vm91_vm0, %v78_v11  ;;  %v259_v13 = vld [vmem:[%s1461_s5] sm:$0xff]  ;;  %1059 = vmatprep.subr.bf16.mxu1 %v1058_v7  ;;  %v346_v17 = vld [vmem:[%s1463_s7 + $0x8] sm:$0xff]  ;;  %v262_v19 = vld [vmem:[%s1461_s5 + $0x18] sm:$0xff] }
  0x3b   :  { %1053 = vmatpush3.bf16.msra.mxu0 %v1050_v3  ;;  %v345_v15 = vld [vmem:[%s1463_s7] sm:$0xff]  ;;  %1061 = vmatpush3.bf16.msra.mxu1 %v1058_v7  ;;  %v1066_v16 = vpack.c.bf16 %v260_v14, %v259_v13  ;;  %v79_v21 = vld [vmem:[#allocation2 + $0x8] sm:$0xff]  ;;  %v1070_v22 = vpack.c.bf16 %v262_v19, %v261_v18  ;;  %v347_v23 = vld [vmem:[%s1463_s7 + $0x10] sm:$0xff] }
  0x3c   :  { %1055 = vmatprep.subr.bf16.mxu0 %v1054_v8  ;;  %1063 = vmatprep.subr.bf16.mxu1 %v1062_v12  ;;  %v1074_v20 = vpack.c.bf16 %v346_v17, %v345_v15  ;;  %v348_v24 = vld [vmem:[%s1463_s7 + $0x18] sm:$0xff]  ;;  %v900_v28 = vld [vmem:[%s1460_s4] ss:$0 sm:$0xff] }
  0x3d   :  { %978 = vmatprep.mubr.msk.f32.mxu1 %vm91_vm0, %v78_v11  ;;  %v1078_v25 = vpack.c.bf16 %v348_v24, %v347_v23  ;;  %v897_v35 = vld [vmem:[%s1458_s2] ss:$0 sm:$0xff] }
  0x3e   :  { %v903_v38 = vld [vmem:[%s1462_s6] ss:$0 sm:$0xff]  ;;  %s1223_s6 = smov [#allocation8]  }
  0x3f   :  { %1057 = vmatpush3.bf16.msra.mxu0 %v1054_v8  ;;  %1065 = vmatpush3.bf16.msra.mxu1 %v1062_v12  ;;  %s884_s8 = sshll.u32 %s1223_s6, 4  ;;  %s885_s8 = int_to_ptr.vmem [resolvable:$true] %s884_s8 }
  0x40   :  { %1067 = vmatprep.subr.bf16.mxu0 %v1066_v16  ;;  %1075 = vmatprep.subr.bf16.mxu1 %v1074_v20  ;;  %s1188_s3 = scalar_lea.vmem %s885_s8, 256  ;;  %p1193_p11 = scmp.lt.s32.totalorder %s885_s8, %s885_s8 }
  0x41   :  { %p1189_p10 = scmp.ne.s32.totalorder %s885_s8, %s1188_s3  ;;  %p1194_p12 = scmp.lt.s32.totalorder %s1188_s3, %s1188_s3 }
  0x42   :  { %968 = vmatmul.mubr.msk.f32.vlgmr.msra.gmra.mrb[0].mxu0 %vm91_vm0, %v79_v21  ;;  %979 = vmatmul.mubr.msk.f32.vlgmr.msra.gmra.mrb[0].mxu1 %vm91_vm0, %v79_v21 }
  0x43   :  { %1069 = vmatpush3.bf16.msra.mxu0 %v1066_v16  ;;  %989 = vmatprep.mubr.msk.f32.mxu0 %vm91_vm0, %v78_v11  ;;  %p1195_p13 = por %p1194_p12, %p1193_p11 }
  0x44   :  { %1071 = vmatprep.subr.bf16.mxu0 %v1070_v22  ;;  %1077 = vmatpush3.bf16.msra.mxu1 %v1074_v20 }
  0x45   :  { %1079 = vmatprep.subr.bf16.mxu1 %v1078_v25  ;;  %p1196_p0 = pnand %p1195_p13, %p1189_p10 }
  0x47   :  { %1073 = vmatpush3.bf16.msra.mxu0 %v1070_v22 }
  0x48   :  { %1081 = vmatpush3.bf16.msra.mxu1 %v1078_v25  ;;  %1003 = vmatprep.subr.bf16.mxu0 %v1221_v26 }
  0x49   :  { %1009 = vmatprep.subr.bf16.mxu1 %v1221_v26 }
  0x4a   :  { %990 = vmatmul.mubr.msk.f32.vlgmr.msra.gmra.mrb[2].mxu0 %vm91_vm0, %v79_v21 }
  0x4b   :  { %1005 = vmatprep.mubr.msk.bf16.mxu0 %vm1222_vm1, %v1221_v26 }
 0x115   :  { %v969_v27 = vpop.f32.mrb[0].mxu0  ;;  %v980_v29 = vpop.f32.mrb[0].mxu1 }
 0x116   :  { %v164_v30 = vpop.f32.mrb[1].mxu0  ;;  %v250_v31 = vpop.f32.mrb[1].mxu1  ;;  %v256_v32 = vadd.f32 %v980_v29, %v900_v28  ;;  %v170_v46 = vadd.f32 %v969_v27, %v897_v35 }
 0x117   :  { %v251_v33 = vadd.f32 %v900_v28, %v250_v31  ;;  %v165_v40 = vadd.f32 %v897_v35, %v164_v30 }
 0x118   :  { %v433_v36 = vpack.c.bf16 %v256_v32, %v256_v32  ;;  %v431_v47 = vpack.c.bf16 %v170_v46, %v170_v46 }
 0x119   :  { %v432_v34 = vpack.c.bf16 %v251_v33, %v251_v33  ;;  %v430_v45 = vpack.c.bf16 %v165_v40, %v165_v40 }
 0x11a   :  { %v484_v43 = vsel %vm91_vm0, %v433_v36, 0 }
 0x11b   :  { %v438_v37 = vsel %vm91_vm0, %v432_v34, 0 }
 0x11c   :  { %1004 = vmatpush3.bf16.xpose.msra.mxu0 %v438_v37 }
 0x11d   :  { %v991_v39 = vpop.f32.mrb[2].mxu0  ;;  %1015 = vmatprep.subr.bf16.mxu0 %v1221_v26 }
 0x11e   :  { %v336_v41 = vpop.f32.mrb[3].mxu0  ;;  %v1391_v44 = vadd.f32 %v991_v39, %v903_v38 }
 0x11f   :  { %v1388_v42 = vadd.f32 %v903_v38, %v336_v41 }
 0x120   :  { %v691_v19 = vpack.c.bf16 %v1391_v44, %v1391_v44 }
 0x121   :  { %1000 = vmatprep.mubr.msk.f32.mxu1 %vm91_vm0, %v1388_v42  ;;  %v690_v17 = vpack.c.bf16 %v1388_v42, %v1388_v42 }
 0x122   :  { %1001 = vmatmul.mubr.msk.f32.vlgmr.msra.gmra.mrb[2].mxu1 %vm91_vm0, %v1391_v44  ;;  %v743_v21 = vsel %vm695_vm4, %v691_v19, 0 }
 0x123   :  { %1010 = vmatpush3.bf16.xpose.msra.mxu1 %v484_v43  ;;  %1011 = vmatprep.mubr.msk.bf16.mxu1 %vm1222_vm1, %v1221_v26  ;;  %v697_v20 = vsel %vm695_vm4, %v690_v17, 0 }
 0x124   :  { %1006 = vmatmul.mubr.msk.bf16.vlgmr.msra.gmra.mrb[4].mxu0 %vm91_vm0, %v430_v45  ;;  %1021 = vmatprep.subr.bf16.mxu1 %v1221_v26 }
 0x125   :  { %1017 = vmatprep.mubr.msk.bf16.mxu0 %vm1222_vm1, %v1221_v26 }
 0x12a   :  { %1012 = vmatmul.mubr.msk.bf16.vlgmr.msra.gmra.mrb[4].mxu1 %vm91_vm0, %v431_v47 }
 0x12b   :  { %1023 = vmatprep.mubr.msk.bf16.mxu1 %vm1222_vm1, %v1221_v26 }
 0x1f5   :  { %v1002_v48 = vpop.f32.mrb[2].mxu1 }
 0x1f6   :  { %v421_v49 = vpop.f32.mrb[3].mxu1  ;;  %v553_v55 = vsel %vm549_vm2, %v1002_v48, -inf }
 0x1f7   :  { %v474_v50 = vpop.f32.mrb[4].mxu0  ;;  %v550_v51 = vsel %vm549_vm2, %v421_v49, -inf }
 0x1f8   :  { %v1007_v52 = vpop.f32.mrb[5].mxu0  ;;  %551 = vmax.xlane.f32.xlu0 %v550_v51  ;;  %v527_v59 = vsel %vm526_vm3, %v474_v50, -inf }
 0x1f9   :  { %v477_v53 = vpop.f32.mrb[6].mxu0 }
 0x1fa   :  { %v1008_v54 = vpop.f32.mrb[7].mxu0 }
 0x1fc   :  { %554 = vmax.xlane.f32.xlu0 %v553_v55 }
 0x1fd   :  { %v520_v56 = vpop.f32.mrb[4].mxu1 }
 0x1fe   :  { %v1013_v57 = vpop.f32.mrb[5].mxu1  ;;  %v530_v7 = vsel %vm526_vm3, %v520_v56, -inf }
 0x1ff   :  { %v523_v58 = vpop.f32.mrb[6].mxu1 }
 0x200   :  { %v1014_v60 = vpop.f32.mrb[7].mxu1  ;;  %528 = vmax.xlane.f32.xlu0 %v527_v59 }
 0x285   :  { %v552_v61 = vpop.xlane.xlu0 %551 }
 0x286   :  { %v556_v62 = vsub.f32 %v421_v49, %v552_v61 }
 0x288   :  { %v558_v63 = vmul.f32 1.442695, %v556_v62  ;;  %v785_v62 = vld [vmem:[#allocation7] sm:$0xff] }
 0x289   :  { %v555_v0 = vpop.xlane.xlu0 %554 }
 0x28a   :  { %1098 = vpow2.f32 %v558_v63  ;;  %v557_v1 = vsub.f32 %v1002_v48, %v555_v0  ;;  %v786_v63 = vld [vmem:[#allocation7 + $0x8] sm:$0xff] }
 0x28b   :  { %v1082_v0 = vpack.c.bf16 %v786_v63, %v785_v62 }
 0x28c   :  { %v560_v2 = vmul.f32 1.442695, %v557_v1 }
 0x28d   :  { %v529_v22 = vpop.xlane.xlu0 %528 }
 0x28e   :  { %1100 = vpow2.f32 %v560_v2  ;;  %v533_v23 = vsub.f32 %v474_v50, %v529_v22  ;;  %v914_v22 = vld [vmem:[%s1465_s9] ss:$0 sm:$0xff] }
 0x290   :  { %v535_v25 = vmul.f32 1.442695, %v533_v23 }
 0x294   :  { %v1099_v3 = vpop.eup %1098 }
 0x295   :  { %v562_v4 = vsel %vm549_vm2, %v1099_v3, 0.0 }
 0x296   :  { %563 = vadd.xlane.f32.xlu1 %v562_v4 }
 0x298   :  { %v1101_v5 = vpop.eup %1100 }
 0x299   :  { %v565_v6 = vsel %vm549_vm2, %v1101_v5, 0.0 }
 0x29a   :  { %566 = vadd.xlane.f32.xlu1 %v565_v6 }
 0x29e   :  { %531 = vmax.xlane.f32.xlu1 %v530_v7 }
 0x323   :  { %v564_v8 = vpop.xlane.xlu1 %563 }
 0x324   :  { %1102 = vrcp.f32 %v564_v8 }
 0x327   :  { %v567_v9 = vpop.xlane.xlu1 %566 }
 0x328   :  { %1104 = vrcp.f32 %v567_v9 }
 0x329   :  { %1106 = vpow2.f32 %v535_v25 }
 0x32b   :  { %v532_v24 = vpop.xlane.xlu1 %531 }
 0x32c   :  { %v534_v27 = vsub.f32 %v520_v56, %v532_v24 }
 0x32e   :  { %v1103_v10 = vpop.eup %1102  ;;  %v537_v28 = vmul.f32 1.442695, %v534_v27 }
 0x32f   :  { %v570_v11 = vmul.f32 %v1103_v10, %v1099_v3 }
 0x330   :  { %1108 = vpow2.f32 %v537_v28 }
 0x331   :  { %v572_v12 = vpack.c.bf16 %v570_v11, %v570_v11  ;;  %v787_v11 = vld [vmem:[#allocation7 + $0x10] sm:$0xff] }
 0x332   :  { %v1105_v13 = vpop.eup %1104 }
 0x333   :  { %v575_v14 = vsel %vm549_vm2, %v572_v12, 0  ;;  %v571_v15 = vmul.f32 %v1105_v13, %v1101_v5  ;;  %v1107_v32 = vpop.eup %1106 }
 0x334   :  { %1016 = vmatpush3.bf16.xpose.msra.mxu0 %v575_v14  ;;  %v539_v37 = vsel %vm526_vm3, %v1107_v32, 0.0 }
 0x335   :  { %v573_v16 = vpack.c.bf16 %v571_v15, %v571_v15  ;;  %1027 = vmatprep.subr.bf16.mxu0 %v1221_v26 }
 0x337   :  { %v618_v18 = vsel %vm549_vm2, %v573_v16, 0 }
 0x338   :  { %1022 = vmatpush3.bf16.xpose.msra.mxu1 %v618_v18 }
 0x339   :  { %1033 = vmatprep.subr.bf16.mxu1 %v1221_v26 }
 0x33a   :  { %v1109_v38 = vpop.eup %1108 }
 0x33b   :  { %1018 = vmatmul.mubr.msk.bf16.vlgmr.msra.gmra.mrb[8].mxu0 %vm549_vm2, %v572_v12  ;;  %v542_v41 = vsel %vm526_vm3, %v1109_v38, 0.0  ;;  %v788_v12 = vld [vmem:[#allocation7 + $0x18] sm:$0xff] }
 0x33c   :  { %1028 = vmatpush3.bf16.msra.mxu0 %v697_v20  ;;  %1029 = vmatprep.mubr.msk.bf16.mxu0 %vm1222_vm1, %v1221_v26  ;;  %v1086_v13 = vpack.c.bf16 %v788_v12, %v787_v11 }
 0x33d   :  { %1083 = vmatprep.subr.bf16.mxu0 %v1082_v0 }
 0x33f   :  { %1024 = vmatmul.mubr.msk.bf16.vlgmr.msra.gmra.mrb[8].mxu1 %vm549_vm2, %v573_v16 }
 0x340   :  { %1034 = vmatpush3.bf16.msra.mxu1 %v743_v21  ;;  %1035 = vmatprep.mubr.msk.bf16.mxu1 %vm1222_vm1, %v1221_v26 }
 0x40e   :  { %v611_v29 = vpop.f32.mrb[8].mxu0 }
 0x40f   :  { %v1019_v30 = vpop.f32.mrb[9].mxu0  ;;  %v660_v31 = vsel %vm526_vm3, %v611_v29, 0.0 }
 0x410   :  { %661 = vadd.xlane.f32.xlu0 %v660_v31  ;;  %v614_v33 = vpop.f32.mrb[10].mxu0 }
 0x411   :  { %v1020_v34 = vpop.f32.mrb[11].mxu0 }
 0x412   :  { %v654_v35 = vpop.f32.mrb[8].mxu1 }
 0x413   :  { %v1025_v36 = vpop.f32.mrb[9].mxu1  ;;  %v663_v26 = vsel %vm526_vm3, %v654_v35, 0.0 }
 0x414   :  { %664 = vadd.xlane.f32.xlu1 %v663_v26  ;;  %v657_v39 = vpop.f32.mrb[10].mxu1  ;;  %540 = vadd.xlane.f32.xlu0 %v539_v37 }
 0x415   :  { %v1026_v40 = vpop.f32.mrb[11].mxu1 }
 0x418   :  { %543 = vadd.xlane.f32.xlu1 %v542_v41 }
 0x49d   :  { %v662_v42 = vpop.xlane.xlu0 %661 }
 0x49e   :  { %v666_v43 = vadd.f32 1e-08, %v662_v42 }
 0x4a0   :  { %1110 = vrcp.f32 %v666_v43 }
 0x4a1   :  { %v665_v44 = vpop.xlane.xlu1 %664  ;;  %v541_v45 = vpop.xlane.xlu0 %540 }
 0x4a2   :  { %v667_v46 = vadd.f32 1e-08, %v665_v44  ;;  %1112 = vrcp.f32 %v541_v45 }
 0x4a4   :  { %1114 = vrcp.f32 %v667_v46 }
 0x4a5   :  { %v544_v47 = vpop.xlane.xlu1 %543 }
 0x4a6   :  { %1116 = vrcp.f32 %v544_v47 }
 0x4aa   :  { %v1111_v48 = vpop.eup %1110 }
 0x4ab   :  { %v670_v49 = vmul.f32 8.0, %v1111_v48 }
 0x4ac   :  { %v1113_v50 = vpop.eup %1112 }
 0x4ad   :  { %v547_v51 = vmul.f32 %v1113_v50, %v1107_v32  ;;  %v672_v52 = vmul.f32 %v670_v49, %v611_v29 }
 0x4ae   :  { %v1115_v53 = vpop.eup %1114 }
 0x4af   :  { %v671_v54 = vmul.f32 8.0, %v1115_v53  ;;  %v674_v55 = vmul.f32 %v672_v52, %v547_v51 }
 0x4b0   :  { %v1117_v56 = vpop.eup %1116 }
 0x4b1   :  { %v676_v57 = vsel %vm526_vm3, %v674_v55, 0.0  ;;  %v548_v58 = vmul.f32 %v1117_v56, %v1109_v38  ;;  %v673_v59 = vmul.f32 %v671_v54, %v654_v35 }
 0x4b2   :  { %677 = vadd.xlane.f32.xlu0 %v676_v57 }
 0x4b3   :  { %v675_v60 = vmul.f32 %v673_v59, %v548_v58 }
 0x4b5   :  { %v679_v61 = vsel %vm526_vm3, %v675_v60, 0.0 }
 0x4b6   :  { %680 = vadd.xlane.f32.xlu1 %v679_v61 }
 0x53f   :  { %v678_v1 = vpop.xlane.xlu0 %677 }
 0x540   :  { %v682_v2 = vadd.f32 1e-08, %v678_v1 }
 0x542   :  { %1118 = vrcp.f32 %v682_v2 }
 0x543   :  { %v681_v3 = vpop.xlane.xlu1 %680 }
 0x544   :  { %v683_v4 = vadd.f32 1e-08, %v681_v3 }
 0x546   :  { %1120 = vrcp.f32 %v683_v4 }
 0x54c   :  { %v1119_v5 = vpop.eup %1118 }
 0x54d   :  { %v686_v6 = vmul.f32 %v1119_v5, %v674_v55 }
 0x54f   :  { %v688_v7 = vpack.c.bf16 %v686_v6, %v686_v6 }
 0x550   :  { %v1121_v8 = vpop.eup %1120 }
 0x551   :  { %v687_v9 = vmul.f32 %v1121_v8, %v675_v60  ;;  %1030 = vmatmul.mubr.msk.bf16.vlgmr.msra.gmra.mrb[12].mxu0 %vm526_vm3, %v688_v7 }
 0x552   :  { %1085 = vmatpush3.bf16.msra.mxu0 %v1082_v0 }
 0x553   :  { %v689_v10 = vpack.c.bf16 %v687_v9, %v687_v9  ;;  %1087 = vmatprep.subr.bf16.mxu0 %v1086_v13 }
 0x555   :  { %1036 = vmatmul.mubr.msk.bf16.vlgmr.msra.gmra.mrb[12].mxu1 %vm526_vm3, %v689_v10 }
 0x556   :  { %1089 = vmatpush3.bf16.msra.mxu0 %v1086_v13 }
 0x624   :  { %v733_v14 = vpop.f32.mrb[12].mxu0 }
 0x625   :  { %v1031_v15 = vpop.f32.mrb[13].mxu0  ;;  %1047 = vmatprep.mubr.msk.f32.mxu0 %vm91_vm0, %v733_v14 }
 0x626   :  { %v736_v16 = vpop.f32.mrb[14].mxu0 }
 0x627   :  { %v1032_v17 = vpop.f32.mrb[15].mxu0 }
 0x628   :  { %v779_v18 = vpop.f32.mrb[12].mxu1 }
 0x629   :  { %v1037_v19 = vpop.f32.mrb[13].mxu1  ;;  %1048 = vmatmul.mubr.msk.f32.vlgmr.msra.gmra.mrb[16].mxu0 %vm91_vm0, %v779_v18 }
 0x62a   :  { %v782_v20 = vpop.f32.mrb[14].mxu1 }
 0x62b   :  { %v1038_v21 = vpop.f32.mrb[15].mxu1 }
 0x6fc   :  { %v1049_v23 = vpop.f32.mrb[16].mxu0 }
 0x6fd   :  { %v874_v24 = vadd.f32 %v1049_v23, %v914_v22  ;;  %v868_v25 = vpop.f32.mrb[17].mxu0 }
 0x6fe   :  { %v869_v27 = vadd.f32 %v914_v22, %v868_v25 }
 0x6ff   :  { %878 = vst.msk [vmem:[#allocation8 + $0x8] sm:$0xff] %vm91_vm0, %v874_v24 }
 0x700   :  { %877 = vst.msk [vmem:[#allocation8] sm:$0xff] %vm91_vm0, %v869_v27 }
 0x701   :  { %1199 = shalt.err (!%p1196_p0)
}
 0x702   :  { %s1200_s19 = scalar_lea.hbm %s1466_s10, 256 }
 0x703   :  { %p1201_p1 = scmp.ne.s32.totalorder %s1466_s10, %s1200_s19  ;;  %p1204_p2 = scmp.lt.u32.totalorder %s1200_s19, %s1466_s10 }
 0x705   :  { %p1206_p3 = pnand %p1204_p2, %p1201_p1 }
 0x707   :  { %1209 = shalt.err (!%p1206_p3)
}
 0x708   :  { %890 = dma.vmem_to_hbm [thread:$0]  %s885_s8, 256, %s1466_s10, [#allocation4], %s1218_s25, %s1218_s25, %s1219_s26  }
 0x709   :  { %1214 = dma.done.wait [#allocation4], 256  }
 0x70a   :  { %1215 = vsyncadd [#allocation4], 4294967040 }
 0x70b   :  { %894 = vsyncpa [#allocation3], 1 }
 0x70c   :  { %895 = vsyncpa [#allocation6], 1 }
 0x70d   :  { %896 = vsyncpa [#allocation4], 1 }

</bundles_post_ra>
